<compile_context>
chip_gen: v5e
topology: v5e:2x2
jax: 0.10.0
libtpu: 0.0.40
codegen_flags: <defaults>
</compile_context>

<pallas_src>
import jax
import jax.numpy as jnp
from jax.experimental import pallas as pl
from jax.experimental.pallas import tpu as pltpu


def _cdiv(a, b):
    return (a + b - 1) // b


def _round_up(a, b):
    return _cdiv(a, b) * b


def _vmem_budget_bytes():
    """Generation-aware VMEM budget (~7/8 of physical, leaving headroom for Mosaic
    internals): ~112 MiB on v5e/v6e (128 MiB VMEM), ~56 MiB on v7x (64 MiB / TC)."""
    cap = 64 << 20  # conservative fallback (v7x per-TC size)
    try:
        cap = int(pltpu.get_tpu_info().vmem_capacity_bytes)
    except Exception:
        pass
    return (cap * 7) // 8


def _resident_vmem_bytes(tm, E_pad, H_pad, isz, osz):
    return (2 * tm * E_pad * isz          # x tile (double-buffered)
            + 2 * E_pad * H_pad * isz     # W1^T (constant index_map; 2 bufs allocated)
            + 2 * H_pad * E_pad * isz     # W2^T
            + 2 * 8 * H_pad * 4           # b1 (sublane-padded f32)
            + 2 * 8 * E_pad * 4           # b2
            + 2 * tm * E_pad * osz        # out tile
            + tm * H_pad * 4              # f32 intermediate h (internal scratch)
            + tm * E_pad * 4)             # f32 y before cast


def _streamed_vmem_bytes(tm, th, E_pad, isz, osz):
    return (2 * tm * E_pad * isz          # x tile
            + 2 * E_pad * th * isz        # W1 tile
            + 2 * th * E_pad * isz        # W2 tile
            + 2 * 8 * th * 4              # b1 tile
            + 2 * 8 * E_pad * 4           # b2
            + 2 * tm * E_pad * osz        # out tile
            + tm * E_pad * 4              # f32 accumulator scratch
            + tm * th * 4                 # f32 intermediate h
            + tm * E_pad * 4)             # f32 contribution before accumulate


def ffn_resident_kernel(x_ref, w1_ref, b1_ref, w2_ref, b2_ref, o_ref):
    # x_ref: (tm, E_pad)  w1_ref: (E_pad, H_pad)  b1_ref: (1, H_pad)
    # w2_ref: (H_pad, E_pad)  b2_ref: (1, E_pad)  o_ref: (tm, E_pad)
    h = jnp.dot(x_ref[...], w1_ref[...], preferred_element_type=jnp.float32)
    h = jnp.maximum(h + b1_ref[...].astype(jnp.float32), 0.0)
    y = jnp.dot(h.astype(w2_ref.dtype), w2_ref[...], preferred_element_type=jnp.float32)
    o_ref[...] = (y + b2_ref[...].astype(jnp.float32)).astype(o_ref.dtype)


def ffn_streamed_kernel(x_ref, w1_ref, b1_ref, w2_ref, b2_ref, o_ref, acc_ref):
    # x_ref: (tm, E_pad)  w1_ref: (E_pad, th)  b1_ref: (1, th)
    # w2_ref: (th, E_pad)  b2_ref: (1, E_pad)  o_ref: (tm, E_pad)
    # acc_ref: (tm, E_pad) f32 scratch, resident across the hidden ("arbitrary") axis.
    h_idx = pl.program_id(1)
    last = pl.num_programs(1) - 1

    @pl.when(h_idx == 0)
    def _():
        acc_ref[...] = jnp.zeros_like(acc_ref)

    h = jnp.dot(x_ref[...], w1_ref[...], preferred_element_type=jnp.float32)
    h = jnp.maximum(h + b1_ref[...].astype(jnp.float32), 0.0)
    contrib = jnp.dot(h.astype(w2_ref.dtype), w2_ref[...],
                      preferred_element_type=jnp.float32)

    @pl.when(h_idx < last)
    def _():
        acc_ref[...] += contrib

    # Finalize fused into the last hidden step: avoids one extra (tm, E_pad) f32
    # accumulator write+read per row tile.
    @pl.when(h_idx == last)
    def _():
        o_ref[...] = (acc_ref[...] + contrib
                      + b2_ref[...].astype(jnp.float32)).astype(o_ref.dtype)


def prepare_params(w1, b1, w2, b2, *, compute_dtype=jnp.bfloat16):
    """One-time parameter layout (hoisted out of the per-call path).

    PyTorch Linear layout in: w1 (H, E), b1 (H,), w2 (E, H), b2 (E,).
    Returns lane-dense, 128-padded, transposed weights cast to the MXU compute
    dtype (default bf16) and f32 biases.
    """
    H, E = w1.shape
    E_pad = _round_up(E, 128)
    H_pad = _round_up(H, 128)
    cdt = jnp.dtype(compute_dtype)
    # Zero padding is semantics-preserving: padded E columns contribute 0, padded hidden
    # units get bias 0 -> relu(0)=0 -> 0 contribution through W2, padded outputs sliced off.
    w1t = jnp.pad(w1.T, ((0, E_pad - E), (0, H_pad - H))).astype(cdt)   # (E_pad, H_pad)
    w2t = jnp.pad(w2.T, ((0, H_pad - H), (0, E_pad - E))).astype(cdt)   # (H_pad, E_pad)
    b1r = jnp.pad(b1.reshape(1, H), ((0, 0), (0, H_pad - H))).astype(jnp.float32)
    b2r = jnp.pad(b2.reshape(1, E), ((0, 0), (0, E_pad - E))).astype(jnp.float32)
    return dict(w1t=w1t, b1r=b1r, w2t=w2t, b2r=b2r,
                E=E, H=H, E_pad=E_pad, H_pad=H_pad, compute_dtype=cdt)


def feed_forward_layer(x, params, *, tm=None, th=None):
    """FeedForwardLayer forward: ff2(relu(ff1(x))).  x: (B, S, E) -> (B, S, E)."""
    B, S, E = x.shape
    assert E == params["E"], "embedding dim mismatch"
    H = params["H"]
    E_pad, H_pad = params["E_pad"], params["H_pad"]
    cdt = params["compute_dtype"]
    w1t, b1r, w2t, b2r = params["w1t"], params["b1r"], params["w2t"], params["b2r"]

    out_dtype = x.dtype
    isz = jnp.dtype(cdt).itemsize
    osz = jnp.dtype(out_dtype).itemsize
    sublane_min = 16 if isz <= 2 else 8

    M = B * S
    M_ru = _round_up(M, sublane_min)
    budget = _vmem_budget_bytes()

    # --- row tile: default 512 (multiples of 256 keep the 256x256 MXU full on v6e/v7x);
    #     for small M split into >= 2 row tiles so the "parallel" axis shards across both
    #     TensorCores on v7x megacore.
    tm_desired = 512 if tm is None else int(tm)
    n_rows = _cdiv(M_ru, tm_desired)
    if n_rows <= 1 and M_ru >= 2 * sublane_min:
        n_rows = 2
    tm_sel = _round_up(_cdiv(M_ru, n_rows), sublane_min)
    if tm_sel >= 256:
        tm_sel = _round_up(tm_sel, 256)

    # --- path selection: pin W1/W2 in VMEM when the full working set fits the budget
    #     (shrinking tm if needed -- weight residency beats a bigger row tile).
    use_resident = False
    for cand in (tm_sel, 512, 256, 128, 64, 32, 16, 8):
        cand = _round_up(max(sublane_min, min(cand, tm_sel)), sublane_min)
        if _resident_vmem_bytes(cand, E_pad, H_pad, isz, osz) <= (budget * 9) // 10:
            use_resident = True
            tm_sel = cand
            break

    M_pad = _round_up(max(M_ru, tm_sel), tm_sel)
    n_row_tiles = M_pad // tm_sel

    if use_resident:
        grid = (n_row_tiles,)
        in_specs = [
            pl.BlockSpec((tm_sel, E_pad), lambda i: (i, 0)),    # x row tile
            pl.BlockSpec((E_pad, H_pad), lambda i: (0, 0)),     # W1^T, resident
            pl.BlockSpec((1, H_pad), lambda i: (0, 0)),         # b1, resident
            pl.BlockSpec((H_pad, E_pad), lambda i: (0, 0)),     # W2^T, resident
            pl.BlockSpec((1, E_pad), lambda i: (0, 0)),         # b2, resident
        ]
        out_specs = pl.BlockSpec((tm_sel, E_pad), lambda i: (i, 0))
        scratch_shapes = []
        kernel = ffn_resident_kernel
        dim_sem = ("parallel",)
        # weights are read from HBM exactly once
        bytes_accessed = (M_pad * E_pad * isz + 2 * E_pad * H_pad * isz
                          + (H_pad + E_pad) * 4 + M_pad * E_pad * osz)
    else:
        # hidden tile: largest multiple of 128 that divides H_pad (no dead columns),
        # is <= desired, and fits the VMEM budget.
        th_desired = 512 if th is None else int(th)
        divisors = sorted({d for d in range(128, H_pad + 1, 128) if H_pad % d == 0},
                          reverse=True)
        th_sel = None
        for d in divisors:
            if d <= th_desired and \
               _streamed_vmem_bytes(tm_sel, d, E_pad, isz, osz) <= (budget * 9) // 10:
                th_sel = d
                break
        if th_sel is None:
            th_sel = 128
            while tm_sel > sublane_min and \
                  _streamed_vmem_bytes(tm_sel, th_sel, E_pad, isz, osz) > (budget * 9) // 10:
                tm_sel = _round_up(max(sublane_min, tm_sel // 2), sublane_min)
            M_pad = _round_up(max(M_ru, tm_sel), tm_sel)
            n_row_tiles = M_pad // tm_sel

        grid = (n_row_tiles, H_pad // th_sel)
        in_specs = [
            pl.BlockSpec((tm_sel, E_pad), lambda i, h: (i, 0)),   # x row tile
            pl.BlockSpec((E_pad, th_sel), lambda i, h: (0, h)),   # W1^T hidden tile
            pl.BlockSpec((1, th_sel), lambda i, h: (0, h)),       # b1 hidden tile
            pl.BlockSpec((th_sel, E_pad), lambda i, h: (h, 0)),   # W2^T hidden tile
            pl.BlockSpec((1, E_pad), lambda i, h: (0, 0)),        # b2 (full)
        ]
        out_specs = pl.BlockSpec((tm_sel, E_pad), lambda i, h: (i, 0))
        scratch_shapes = [pltpu.VMEM((tm_sel, E_pad), jnp.float32)]
        kernel = ffn_streamed_kernel
        dim_sem = ("parallel", "arbitrary")
        # weights are re-streamed once per row tile
        bytes_accessed = (M_pad * E_pad * isz
                          + n_row_tiles * 2 * E_pad * H_pad * isz
                          + (H_pad + E_pad) * 4 + M_pad * E_pad * osz)

    x2 = jnp.pad(x.reshape(M, E), ((0, M_pad - M), (0, E_pad - E))).astype(cdt)

    cost = pl.CostEstimate(
        flops=4 * M * E * H,                  # 2*M*E*H per matmul, two matmuls
        transcendentals=0,
        bytes_accessed=int(bytes_accessed),
    )

    out2 = pl.pallas_call(
        kernel,
        out_shape=jax.ShapeDtypeStruct((M_pad, E_pad), out_dtype),
        grid_spec=pltpu.PrefetchScalarGridSpec(
            num_scalar_prefetch=0,
            grid=grid,
            in_specs=in_specs,
            out_specs=out_specs,
            scratch_shapes=scratch_shapes,
        ),
        compiler_params=pltpu.CompilerParams(
            dimension_semantics=dim_sem,
            vmem_limit_bytes=int(budget),
        ),
        cost_estimate=cost,
    )(x2, w1t, b1r, w2t, b2r)

    return out2[:M, :E].reshape(B, S, E)


def init_params(key, embedding_dim, hidden_layer_dim, dtype=jnp.float32):
    """Deterministic init mimicking PyTorch Linear's U(-1/sqrt(fan_in), 1/sqrt(fan_in))."""
    k1, k2, k3, k4 = jax.random.split(key, 4)
    bound1 = 1.0 / (embedding_dim ** 0.5)
    bound2 = 1.0 / (hidden_layer_dim ** 0.5)
    w1 = jax.random.uniform(k1, (hidden_layer_dim, embedding_dim), dtype,
                            minval=-bound1, maxval=bound1)
    b1 = jax.random.uniform(k2, (hidden_layer_dim,), dtype,
                            minval=-bound1, maxval=bound1)
    w2 = jax.random.uniform(k3, (embedding_dim, hidden_layer_dim), dtype,
                            minval=-bound2, maxval=bound2)
    b2 = jax.random.uniform(k4, (embedding_dim,), dtype,
                            minval=-bound2, maxval=bound2)
    return w1, b1, w2, b2


if __name__ == "__main__":
    batch, seq, embedding_dim, hidden_layer_dim = 2, 8, 32, 64

    key = jax.random.PRNGKey(0)
    kx, kp = jax.random.split(key)
    x = jax.random.normal(kx, (batch, seq, embedding_dim), jnp.float32)
    w1, b1, w2, b2 = init_params(kp, embedding_dim, hidden_layer_dim)

    # Pure-JAX reference
    h_ref = jnp.maximum(x @ w1.T + b1, 0.0)
    y_ref = h_ref @ w2.T + b2

    # Default path: bf16 MXU inputs, f32 accumulation (parameters laid out once).
    params_bf16 = prepare_params(w1, b1, w2, b2)          # compute_dtype defaults to bf16
    out_bf16 = jax.block_until_ready(feed_forward_layer(x, params_bf16))
    assert out_bf16.shape == (batch, seq, embedding_dim)
    assert jnp.allclose(out_bf16, y_ref, atol=5e-2, rtol=5e-2)

    # f32 compute path (tighter accuracy check).
    params_f32 = prepare_params(w1, b1, w2, b2, compute_dtype=jnp.float32)
    out_f32 = jax.block_until_ready(feed_forward_layer(x, params_f32))
    assert out_f32.shape == (batch, seq, embedding_dim)
    assert jnp.allclose(out_f32, y_ref, atol=1e-4, rtol=1e-4)

    print("KERNEL_OK")
</pallas_src>

<mosaic_0001>
module attributes {stable_mosaic.version = 11 : i64} {
  func.func @ffn_resident_kernel(%arg0: i32, %arg1: memref<16x128xbf16, #tpu.memory_space<vmem>>, %arg2: memref<128x128xbf16, #tpu.memory_space<vmem>>, %arg3: memref<1x128xf32, #tpu.memory_space<vmem>>, %arg4: memref<128x128xbf16, #tpu.memory_space<vmem>>, %arg5: memref<1x128xf32, #tpu.memory_space<vmem>>, %arg6: memref<16x128xf32, #tpu.memory_space<vmem>>) attributes {dimension_semantics = [#tpu.dimension_semantics<parallel>], iteration_bounds = array<i64: 1>, scalar_prefetch = 0 : i64, scratch_operands = 0 : i64, tpu.core_type = #tpu.core_type<tc>, window_params = [{transform_indices = @transform_0, window_bounds = array<i64: 16, 128>}, {pipeline_mode = #tpu.pipeline_mode<synchronous>, transform_indices = @transform_1, window_bounds = array<i64: 128, 128>}, {pipeline_mode = #tpu.pipeline_mode<synchronous>, transform_indices = @transform_2, window_bounds = array<i64: 1, 128>}, {pipeline_mode = #tpu.pipeline_mode<synchronous>, transform_indices = @transform_3, window_bounds = array<i64: 128, 128>}, {pipeline_mode = #tpu.pipeline_mode<synchronous>, transform_indices = @transform_4, window_bounds = array<i64: 1, 128>}, {transform_indices = @transform_5, window_bounds = array<i64: 16, 128>}]} {
    %c0 = arith.constant 0 : index
    %c0_0 = arith.constant 0 : index
    %0 = vector.load %arg1[%c0, %c0_0] : memref<16x128xbf16, #tpu.memory_space<vmem>>, vector<16x128xbf16>
    %c0_1 = arith.constant 0 : index
    %c0_2 = arith.constant 0 : index
    %1 = vector.load %arg2[%c0_1, %c0_2] : memref<128x128xbf16, #tpu.memory_space<vmem>>, vector<128x128xbf16>
    %cst = arith.constant dense<0.000000e+00> : vector<16x128xf32>
    %2 = tpu.matmul %0, %1, %cst {dimension_numbers = #tpu.dot_dimension_numbers<[1], [0], [0], [1], [0, 0, 1, 1], [], []>} : vector<16x128xbf16>, vector<128x128xbf16>, vector<16x128xf32> -> vector<16x128xf32>
    %c0_3 = arith.constant 0 : index
    %c0_4 = arith.constant 0 : index
    %3 = vector.load %arg3[%c0_3, %c0_4] : memref<1x128xf32, #tpu.memory_space<vmem>>, vector<1x128xf32>
    %4 = vector.broadcast %3 : vector<1x128xf32> to vector<16x128xf32>
    %5 = arith.addf %2, %4 : vector<16x128xf32>
    %cst_5 = arith.constant 0.000000e+00 : f32
    %6 = vector.broadcast %cst_5 : f32 to vector<16x128xf32>
    %7 = arith.maximumf %5, %6 : vector<16x128xf32>
    %8 = arith.truncf %7 : vector<16x128xf32> to vector<16x128xbf16>
    %c0_6 = arith.constant 0 : index
    %c0_7 = arith.constant 0 : index
    %9 = vector.load %arg4[%c0_6, %c0_7] : memref<128x128xbf16, #tpu.memory_space<vmem>>, vector<128x128xbf16>
    %cst_8 = arith.constant dense<0.000000e+00> : vector<16x128xf32>
    %10 = tpu.matmul %8, %9, %cst_8 {dimension_numbers = #tpu.dot_dimension_numbers<[1], [0], [0], [1], [0, 0, 1, 1], [], []>} : vector<16x128xbf16>, vector<128x128xbf16>, vector<16x128xf32> -> vector<16x128xf32>
    %c0_9 = arith.constant 0 : index
    %c0_10 = arith.constant 0 : index
    %11 = vector.load %arg5[%c0_9, %c0_10] : memref<1x128xf32, #tpu.memory_space<vmem>>, vector<1x128xf32>
    %12 = vector.broadcast %11 : vector<1x128xf32> to vector<16x128xf32>
    %13 = arith.addf %10, %12 : vector<16x128xf32>
    %c0_11 = arith.constant 0 : index
    %c0_12 = arith.constant 0 : index
    %14 = vector.load %arg6[%c0_11, %c0_12] : memref<16x128xf32, #tpu.memory_space<vmem>>, vector<16x128xf32>
    tpu.vector_store %arg6[%c0_11, %c0_12], %13 {strides = array<i32>} : memref<16x128xf32, #tpu.memory_space<vmem>>, vector<16x128xf32>,
    return
  }
  func.func @transform_0(%arg0: i32) -> (i32, i32) {
    %c0_i32 = arith.constant 0 : i32
    %c0_i32_0 = arith.constant 0 : i32
    return %arg0, %c0_i32 : i32, i32
  }
  func.func @transform_1(%arg0: i32) -> (i32, i32) {
    %c0_i32 = arith.constant 0 : i32
    %c0_i32_0 = arith.constant 0 : i32
    %c0_i32_1 = arith.constant 0 : i32
    return %c0_i32, %c0_i32_0 : i32, i32
  }
  func.func @transform_2(%arg0: i32) -> (i32, i32) {
    %c0_i32 = arith.constant 0 : i32
    %c0_i32_0 = arith.constant 0 : i32
    %c0_i32_1 = arith.constant 0 : i32
    return %c0_i32, %c0_i32_0 : i32, i32
  }
  func.func @transform_3(%arg0: i32) -> (i32, i32) {
    %c0_i32 = arith.constant 0 : i32
    %c0_i32_0 = arith.constant 0 : i32
    %c0_i32_1 = arith.constant 0 : i32
    return %c0_i32, %c0_i32_0 : i32, i32
  }
  func.func @transform_4(%arg0: i32) -> (i32, i32) {
    %c0_i32 = arith.constant 0 : i32
    %c0_i32_0 = arith.constant 0 : i32
    %c0_i32_1 = arith.constant 0 : i32
    return %c0_i32, %c0_i32_0 : i32, i32
  }
  func.func @transform_5(%arg0: i32) -> (i32, i32) {
    %c0_i32 = arith.constant 0 : i32
    %c0_i32_0 = arith.constant 0 : i32
    return %arg0, %c0_i32 : i32, i32
  }
}

</mosaic_0001>

<bundles_post_ra>
// kernel: tpu_custom_call.1
= control target key start
LH: loop header
LB: loop body
LE: loop exit
PB: predicated region body
PF: predicated region fallthrough
CT: control target
= control target key end

     0   :  { %10 = vsyncpa [#allocation3], 0  ;;  %s518_s0 = inlined_call_operand.hbm [shape: bf16[16,128], index: 0, kind: input, shape index: {}]   ;;  %s519_s1 = inlined_call_operand.hbm [shape: bf16[128,128], index: 1, kind: input, shape index: {}]   ;;  %s520_s2 = inlined_call_operand.vmem [shape: f32[1,128], index: 2, kind: input, shape index: {}]   ;;  %s521_s3 = inlined_call_operand.hbm [shape: bf16[128,128], index: 3, kind: input, shape index: {}]   ;;  %s522_s4 = inlined_call_operand.vmem [shape: f32[1,128], index: 4, kind: input, shape index: {}]   ;;  %s523_s5 = inlined_call_operand.hbm [shape: f32[16,128], index: 5, kind: output, shape index: {}]  }
   0x1   :  { %11 = vsyncpa [#allocation6], 0 }
   0x2   :  { %12 = vsyncpa [#allocation4], 0  ;;  %s30_s20 = sshll.u32 %s519_s1, 4  ;;  %s462_s21 = smov [#allocation5]   ;;  %s31_s20 = int_to_ptr.hbm [resolvable:$true] %s30_s20 }
   0x3   :  { %s32_s22 = sshll.u32 %s462_s21, 4  ;;  %s17_s25 = sshll.u32 %s518_s0, 4  ;;  %s33_s22 = int_to_ptr.vmem [resolvable:$true] %s32_s22  ;;  %s18_s25 = int_to_ptr.hbm [resolvable:$true] %s17_s25 }
   0x4   :  { %s463_s26 = smov 64   ;;  %s464_s27 = smov 4  }
   0x5   :  { %38 = dma.hbm_to_vmem [thread:$0]  %s31_s20, 1024, %s33_s22, [#allocation6], %s463_s26, %s463_s26, %s464_s27  }
   0x6   :  { %s465_s28 = smov [#allocation2]   ;;  %s45_s7 = sshll.u32 %s521_s3, 4  ;;  %s46_s7 = int_to_ptr.hbm [resolvable:$true] %s45_s7 }
   0x7   :  { %s19_s29 = sshll.u32 %s465_s28, 4  ;;  %s466_s1 = smov [#allocation7]   ;;  %s20_s29 = int_to_ptr.vmem [resolvable:$true] %s19_s29 }
   0x8   :  { %25 = dma.hbm_to_vmem [thread:$0]  %s18_s25, 128, %s20_s29, [#allocation3], %s463_s26, %s463_s26, %s464_s27  }
   0x9   :  { %s47_s8 = sshll.u32 %s466_s1, 4  ;;  %s48_s8 = int_to_ptr.vmem [resolvable:$true] %s47_s8 }
   0xa   :  { %53 = dma.hbm_to_vmem [thread:$0]  %s46_s7, 1024, %s48_s8, [#allocation6], %s463_s26, %s463_s26, %s464_s27  }
   0xb   :  { %456 = dma.done.wait [#allocation3], 128  }
   0xc   :  { %457 = vsyncadd [#allocation3], 4294967168 }
   0xd   :  { %458 = dma.done.wait [#allocation6], 2048  }
   0xe   :  { %459 = vsyncadd [#allocation6], 4294965248  ;;  %v341_v0 = vld [vmem:[#allocation5 + $0x38] sm:$0xff]  ;;  %v340_v1 = vld [vmem:[#allocation5 + $0x30] sm:$0xff]  ;;  %s467_s11 = smov [#allocation8]   ;;  %s468_s15 = smov 128  }
   0xf   :  { %144 = vmatpush.bf16.msra.mxu0 %v341_v0  ;;  %v349_v2 = vld [vmem:[#allocation7 + $0x38] sm:$0xff]  ;;  %v348_v3 = vld [vmem:[#allocation7 + $0x30] sm:$0xff]  ;;  %v339_v4 = vld [vmem:[#allocation5 + $0x28] sm:$0xff]  ;;  %s249_s12 = sshll.u32 %s467_s11, 4  ;;  %s469_s16 = smov 8   ;;  %s250_s12 = int_to_ptr.vmem [resolvable:$true] %s249_s12 }
  0x10   :  { %229 = vmatpush.bf16.msra.mxu1 %v349_v2  ;;  %v347_v5 = vld [vmem:[#allocation7 + $0x28] sm:$0xff]  ;;  %v338_v6 = vld [vmem:[#allocation5 + $0x20] sm:$0xff]  ;;  %v337_v8 = vld [vmem:[#allocation5 + $0x18] sm:$0xff] }
  0x11   :  { %v346_v7 = vld [vmem:[#allocation7 + $0x20] sm:$0xff]  ;;  %v336_v9 = vld [vmem:[#allocation5 + $0x10] sm:$0xff]  ;;  %v335_v10 = vld [vmem:[#allocation5 + $0x8] sm:$0xff] }
  0x12   :  { %v334_v11 = vld [vmem:[#allocation5] sm:$0xff]  ;;  %v333_v12 = vld [vmem:[#allocation2] sm:$0xff]  ;;  %v344_v14 = vld [vmem:[#allocation7 + $0x10] sm:$0xff] }
  0x13   :  { %145 = vmatpush.bf16.msra.mxu0 %v340_v1  ;;  %v345_v13 = vld [vmem:[#allocation7 + $0x18] sm:$0xff]  ;;  %v343_v15 = vld [vmem:[#allocation7 + $0x8] sm:$0xff]  ;;  %v342_v16 = vld [vmem:[#allocation7] sm:$0xff] }
  0x14   :  { %230 = vmatpush.bf16.msra.mxu1 %v348_v3  ;;  %v358_v18 = vld [vmem:[%s520_s2] ss:$0 sm:$0xff]  ;;  %s251_s2 = sshll.u32 %s523_s5, 4  ;;  %s252_s2 = int_to_ptr.hbm [resolvable:$true] %s251_s2 }
  0x15   :  { %v359_v25 = vld [vmem:[%s522_s4] ss:$0 sm:$0xff] }
  0x17   :  { %146 = vmatpush.bf16.msra.mxu0 %v339_v4 }
  0x18   :  { %231 = vmatpush.bf16.msra.mxu1 %v347_v5 }
  0x1b   :  { %147 = vmatpush.bf16.msra.mxu0 %v338_v6 }
  0x1c   :  { %232 = vmatpush.bf16.msra.mxu1 %v346_v7 }
  0x1f   :  { %148 = vmatpush.bf16.msra.mxu0 %v337_v8 }
  0x20   :  { %233 = vmatpush.bf16.msra.mxu1 %v345_v13 }
  0x23   :  { %149 = vmatpush.bf16.msra.mxu0 %v336_v9 }
  0x24   :  { %234 = vmatpush.bf16.msra.mxu1 %v344_v14 }
  0x27   :  { %150 = vmatpush.bf16.msra.mxu0 %v335_v10 }
  0x28   :  { %235 = vmatpush.bf16.msra.mxu1 %v343_v15 }
  0x2b   :  { %151 = vmatpush.bf16.msra.mxu0 %v334_v11 }
  0x2c   :  { %236 = vmatpush.bf16.msra.mxu1 %v342_v16 }
  0x2e   :  { %152 = vmatmul.bf16.vlgmr.msra.gmra.mxu0 %v333_v12 }
  0xab   :  { %v153_v17 = vpop.f32.mrf.mxu0 }
  0xac   :  { %v154_v19 = vadd.f32 %v358_v18, %v153_v17 }
  0xae   :  { %v158_v22 = vmax.f32 %v154_v19, 0.0 }
  0xb3   :  { %v155_v20 = vpop.f32.mrf.mxu0 }
  0xb4   :  { %v156_v21 = vadd.f32 %v358_v18, %v155_v20 }
  0xb6   :  { %v159_v23 = vmax.f32 %v156_v21, 0.0 }
  0xb8   :  { %v160_v24 = vpack.c.bf16 %v159_v23, %v158_v22 }
  0xba   :  { %237 = vmatmul.bf16.vlgmr.msra.gmra.mxu1 %v160_v24 }
 0x137   :  { %v238_v26 = vpop.f32.mrf.mxu1 }
 0x138   :  { %v239_v27 = vadd.f32 %v359_v25, %v238_v26 }
 0x13a   :  { %243 = vst [vmem:[#allocation8] sm:$0xff] %v239_v27 }
 0x13f   :  { %v240_v28 = vpop.f32.mrf.mxu1 }
 0x140   :  { %v241_v29 = vadd.f32 %v359_v25, %v240_v28 }
 0x142   :  { %244 = vst [vmem:[#allocation8 + $0x8] sm:$0xff] %v241_v29 }
 0x143   :  { %257 = dma.vmem_to_hbm [thread:$0]  %s250_s12, 256, %s252_s2, [#allocation4], %s468_s15, %s468_s15, %s469_s16  }
 0x144   :  { %460 = dma.done.wait [#allocation4], 256  }
 0x145   :  { %461 = vsyncadd [#allocation4], 4294967040 }
 0x146   :  { %262 = vsyncpa [#allocation3], 1 }
 0x147   :  { %263 = vsyncpa [#allocation6], 1 }
 0x148   :  { %264 = vsyncpa [#allocation4], 1 }

</bundles_post_ra>
